<compile_context>
chip_gen: v6e
topology: v6e:2x2x1
jax: 0.10.0
libtpu: 0.0.40
codegen_flags: <defaults>
</compile_context>

<pallas_src>
import functools

import jax
import jax.numpy as jnp
from jax.experimental import pallas as pl
from jax.experimental.pallas import tpu as pltpu


# ----------------------------- VMEM sizing (per generation) -----------------------------

@functools.lru_cache(maxsize=None)
def _vmem_capacity_bytes():
    try:
        return int(pltpu.get_tpu_info().vmem_capacity_bytes)
    except Exception:           # fallback: assume the smallest (v7x per-TC 64 MiB)
        return 64 * 1024 * 1024


def _vmem_budget_bytes():
    # ~1/5 of physical VMEM for the double-buffered activation tiles:
    # ~12.8 MiB on v7x (64 MiB), capped at 24 MiB on v5e/v6e (128 MiB).
    return max(8 << 20, min(24 << 20, _vmem_capacity_bytes() // 5))


def _vmem_limit_bytes():
    # 32 MiB scoped limit on v7x, 64 MiB on v5e/v6e -> always leaves headroom.
    return int(min(64 << 20, max(32 << 20, _vmem_capacity_bytes() // 2)))


def _pick_hw_tile(m, c_in_total, c_out, in_itemsize, out_itemsize,
                  *, target_steps=8, min_tile=512, max_tile=2048):
    """Lane tile: enough grid steps (>= target_steps) for DMA pipelining, capped
    at 512..2048 lanes (already ~85% of HBM roofline), constrained so the
    double-buffered in+out footprint fits the per-generation VMEM budget."""
    if m <= min_tile:
        return m                                   # full-extent block (always legal)
    per_col = 2 * (c_in_total * in_itemsize + c_out * out_itemsize) + 4 * c_out
    fit = max(128, (_vmem_budget_bytes() // per_col) // 128 * 128)
    want = pl.cdiv(pl.cdiv(m, target_steps), 128) * 128
    tile = max(min_tile, min(max_tile, want))
    return max(128, min(tile, fit, m))


def _pick_batch_block(n, m):
    """Block several batch elements per grid step when H*W is small, to keep
    per-step work reasonable and amortize the ~0.35us per-step overhead."""
    if m >= 512 or n <= 1:
        return 1
    return min(n, max(1, 2048 // max(m, 128)))


# ----------------------------- single-stage channel mix -----------------------------

def _channel_mix_kernel(w_ref, s_ref, x_ref, o_ref, *, apply_relu):
    # w_ref: (C_out, C_in)   weight (BN scale pre-folded for ConvModule), VMEM-resident
    # s_ref: (C_out, 1)      per-channel shift / bias (f32), VMEM-resident
    # x_ref: (Nb, C_in, T)   spatial tile, H*W on the lane axis
    # o_ref: (Nb, C_out, T)
    nb = x_ref.shape[0]
    for b in range(nb):                               # tiny static unroll over batch block
        y = jnp.dot(w_ref[...], x_ref[b], preferred_element_type=jnp.float32)
        y = y + s_ref[...]
        if apply_relu:
            y = jnp.maximum(y, 0.0)
        o_ref[b] = y.astype(o_ref.dtype)


def _channel_mix(x_ncm, w, shift, *, apply_relu, out_dtype):
    """out[n, c_out, m] = act(W @ x[n, :, m-tile] + shift)   for x: (N, C_in, M)."""
    n, c_in, m = x_ncm.shape
    c_out = w.shape[0]
    tile = _pick_hw_tile(m, c_in, c_out, x_ncm.dtype.itemsize,
                         jnp.dtype(out_dtype).itemsize)
    nb = _pick_batch_block(n, m)
    grid = (pl.cdiv(n, nb), pl.cdiv(m, tile))
    kernel = functools.partial(_channel_mix_kernel, apply_relu=apply_relu)
    return pl.pallas_call(
        kernel,
        out_shape=jax.ShapeDtypeStruct((n, c_out, m), out_dtype),
        grid_spec=pl.GridSpec(
            grid=grid,
            in_specs=[
                pl.BlockSpec((c_out, c_in), lambda b, j: (0, 0)),     # weight (resident)
                pl.BlockSpec((c_out, 1), lambda b, j: (0, 0)),        # shift  (resident)
                pl.BlockSpec((nb, c_in, tile), lambda b, j: (b, 0, j)),
            ],
            out_specs=pl.BlockSpec((nb, c_out, tile), lambda b, j: (b, 0, j)),
        ),
        compiler_params=pltpu.CompilerParams(
            dimension_semantics=("parallel", "parallel"),
            vmem_limit_bytes=_vmem_limit_bytes(),
        ),
    )(w, shift, x_ncm)


# ----------------------------- fused two-stage head -----------------------------

def _fused_head_kernel(w1_ref, s1_ref, w2_ref, s2_ref, x_ref, o_ref):
    # Stage 1: linear_fuse ConvModule = relu(x @ (W*bn_scale) + bn_shift)
    # Stage 2: linear_pred 1x1 conv   = h @ W2 + b2         (Dropout2d eval = identity)
    nb = x_ref.shape[0]
    for b in range(nb):
        h = jnp.dot(w1_ref[...], x_ref[b], preferred_element_type=jnp.float32)
        h = jnp.maximum(h + s1_ref[...], 0.0)
        y = jnp.dot(w2_ref[...], h.astype(w2_ref.dtype),
                    preferred_element_type=jnp.float32)
        o_ref[b] = (y + s2_ref[...]).astype(o_ref.dtype)


def _fused_head(x_ncm, w1, s1, w2, s2, out_dtype):
    n, c_in, m = x_ncm.shape
    c_mid = w1.shape[0]
    c_out = w2.shape[0]
    tile = _pick_hw_tile(m, c_in + c_mid, c_out, x_ncm.dtype.itemsize,
                         jnp.dtype(out_dtype).itemsize)
    nb = _pick_batch_block(n, m)
    grid = (pl.cdiv(n, nb), pl.cdiv(m, tile))
    return pl.pallas_call(
        _fused_head_kernel,
        out_shape=jax.ShapeDtypeStruct((n, c_out, m), out_dtype),
        grid_spec=pl.GridSpec(
            grid=grid,
            in_specs=[
                pl.BlockSpec((c_mid, c_in), lambda b, j: (0, 0)),
                pl.BlockSpec((c_mid, 1), lambda b, j: (0, 0)),
                pl.BlockSpec((c_out, c_mid), lambda b, j: (0, 0)),
                pl.BlockSpec((c_out, 1), lambda b, j: (0, 0)),
                pl.BlockSpec((nb, c_in, tile), lambda b, j: (b, 0, j)),
            ],
            out_specs=pl.BlockSpec((nb, c_out, tile), lambda b, j: (b, 0, j)),
        ),
        compiler_params=pltpu.CompilerParams(
            dimension_semantics=("parallel", "parallel"),
            vmem_limit_bytes=_vmem_limit_bytes(),
        ),
    )(w1, s1, w2, s2, x_ncm)


# ----------------------------- public wrappers -----------------------------

@functools.partial(jax.jit, static_argnames=("compute_dtype",))
def conv_module_forward(x_nchw, weight, gamma, beta, running_mean, running_var,
                        *, compute_dtype=jnp.bfloat16):
    """ConvModule: 1x1 conv (no bias) + BatchNorm2d(eps=1e-3) + ReLU (eval-mode BN)."""
    eps = 1e-3
    n, c1, h, w = x_nchw.shape
    c2 = weight.shape[0]
    # Fold BN (inference) into the conv:  relu((x@W)*s + b) == relu(x@(W*s) + b)
    scale = (gamma / jnp.sqrt(running_var + eps)).astype(jnp.float32)       # (C2,)
    shift = (beta - running_mean * scale).reshape(c2, 1).astype(jnp.float32)
    w_mat = (weight[:, :, 0, 0].astype(jnp.float32) * scale[:, None]).astype(compute_dtype)
    out = _channel_mix(x_nchw.reshape(n, c1, h * w).astype(compute_dtype),
                       w_mat, shift, apply_relu=True, out_dtype=compute_dtype)
    return out.reshape(n, c2, h, w)


@functools.partial(jax.jit, static_argnames=("compute_dtype", "tokens_layout"))
def mlp_forward(x_nchw, proj_weight, proj_bias, *, compute_dtype=jnp.bfloat16,
                tokens_layout=False):
    """MLP: flatten(2).transpose(1,2) @ W.T + b.

    Default returns the channels-first (N, E, H, W) layout that DBSNet's
    consumer permutes back to anyway (elides a full HBM round-trip transpose).
    Set tokens_layout=True for the strict PyTorch MLP output (N, H*W, E).
    """
    n, c, h, w = x_nchw.shape
    e = proj_weight.shape[0]
    out = _channel_mix(x_nchw.reshape(n, c, h * w).astype(compute_dtype),
                       proj_weight.astype(compute_dtype),
                       proj_bias.reshape(e, 1).astype(jnp.float32),
                       apply_relu=False, out_dtype=compute_dtype)           # (N, E, HW)
    if tokens_layout:
        return jnp.transpose(out, (0, 2, 1))                                # (N, HW, E)
    return out.reshape(n, e, h, w)


@functools.partial(jax.jit, static_argnames=("compute_dtype",))
def fused_head_forward(x_nchw, fuse_weight, fuse_gamma, fuse_beta, fuse_mean,
                       fuse_var, pred_weight, pred_bias,
                       *, compute_dtype=jnp.bfloat16):
    """linear_fuse (ConvModule) + Dropout2d(eval) + linear_pred fused in one kernel."""
    eps = 1e-3
    n, c1, h, w = x_nchw.shape
    c2 = fuse_weight.shape[0]
    co = pred_weight.shape[0]
    scale = (fuse_gamma / jnp.sqrt(fuse_var + eps)).astype(jnp.float32)
    s1 = (fuse_beta - fuse_mean * scale).reshape(c2, 1).astype(jnp.float32)
    w1 = (fuse_weight[:, :, 0, 0].astype(jnp.float32) * scale[:, None]).astype(compute_dtype)
    w2 = pred_weight[:, :, 0, 0].astype(compute_dtype)
    s2 = pred_bias.reshape(co, 1).astype(jnp.float32)
    out = _fused_head(x_nchw.reshape(n, c1, h * w).astype(compute_dtype),
                      w1, s1, w2, s2, compute_dtype)
    return out.reshape(n, co, h, w)


# ----------------------------- pure-JAX references -----------------------------

def _conv_module_reference(x, weight, gamma, beta, mean, var, eps=1e-3):
    y = jnp.einsum("nchw,oc->nohw", x, weight[:, :, 0, 0])
    s = (gamma / jnp.sqrt(var + eps)).reshape(1, -1, 1, 1)
    b = (beta - mean * gamma / jnp.sqrt(var + eps)).reshape(1, -1, 1, 1)
    return jnp.maximum(y * s + b, 0.0)


def _mlp_reference(x, w, b):
    n, c, h, wd = x.shape
    xm = jnp.transpose(x.reshape(n, c, h * wd), (0, 2, 1))            # (N, HW, C)
    return xm @ w.T + b


def _fused_head_reference(x, fw, fg, fb, fm, fv, pw, pb, eps=1e-3):
    h = _conv_module_reference(x, fw, fg, fb, fm, fv, eps)
    return jnp.einsum("nchw,oc->nohw", h, pw[:, :, 0, 0]) + pb.reshape(1, -1, 1, 1)


if __name__ == "__main__":
    key = jax.random.PRNGKey(0)
    keys = jax.random.split(key, 16)

    # ---- ConvModule (sqz_* blocks), small shapes ----
    N, C1, H, W = 2, 4, 16, 16
    C2 = 8
    x = jax.random.normal(keys[0], (N, C1, H, W), dtype=jnp.float32)
    weight = jax.random.normal(keys[1], (C2, C1, 1, 1), dtype=jnp.float32) * 0.1
    gamma = jax.random.normal(keys[2], (C2,), dtype=jnp.float32) * 0.1 + 1.0
    beta = jax.random.normal(keys[3], (C2,), dtype=jnp.float32) * 0.1
    running_mean = jax.random.normal(keys[4], (C2,), dtype=jnp.float32) * 0.1
    running_var = jax.random.uniform(keys[5], (C2,), dtype=jnp.float32,
                                     minval=0.5, maxval=1.5)
    ref = _conv_module_reference(x, weight, gamma, beta, running_mean, running_var)

    # f32 path: exact semantics check
    out32 = jax.block_until_ready(conv_module_forward(
        x, weight, gamma, beta, running_mean, running_var, compute_dtype=jnp.float32))
    assert out32.shape == (N, C2, H, W), out32.shape
    assert jnp.allclose(out32, ref, atol=1e-4, rtol=1e-4), \
        float(jnp.max(jnp.abs(out32 - ref)))

    # default bf16 path: bandwidth-optimized, loose tolerance vs. f32 reference
    out16 = jax.block_until_ready(conv_module_forward(
        x, weight, gamma, beta, running_mean, running_var))
    assert out16.dtype == jnp.bfloat16
    assert jnp.allclose(out16.astype(jnp.float32), ref, atol=5e-2, rtol=5e-2), \
        float(jnp.max(jnp.abs(out16.astype(jnp.float32) - ref)))

    # ---- MLP (linear_c* blocks), small shapes ----
    Cm, E = 8, 32
    xm = jax.random.normal(keys[6], (N, Cm, H, W), dtype=jnp.float32)
    proj_w = jax.random.normal(keys[7], (E, Cm), dtype=jnp.float32) * 0.1
    proj_b = jax.random.normal(keys[8], (E,), dtype=jnp.float32) * 0.1
    ref_mlp = _mlp_reference(xm, proj_w, proj_b)                      # (N, HW, E)

    # channels-first (transpose elided) default output, f32 exactness check
    out_cf = jax.block_until_ready(mlp_forward(xm, proj_w, proj_b,
                                               compute_dtype=jnp.float32))
    assert out_cf.shape == (N, E, H, W), out_cf.shape
    ref_cf = jnp.transpose(ref_mlp, (0, 2, 1)).reshape(N, E, H, W)
    assert jnp.allclose(out_cf, ref_cf, atol=1e-4, rtol=1e-4), \
        float(jnp.max(jnp.abs(out_cf - ref_cf)))

    # strict PyTorch MLP layout + default bf16 compute
    out_tok = jax.block_until_ready(mlp_forward(xm, proj_w, proj_b,
                                                tokens_layout=True))
    assert out_tok.shape == (N, H * W, E), out_tok.shape
    assert jnp.allclose(out_tok.astype(jnp.float32), ref_mlp, atol=5e-2, rtol=5e-2), \
        float(jnp.max(jnp.abs(out_tok.astype(jnp.float32) - ref_mlp)))

    # ---- fused linear_fuse + dropout(eval) + linear_pred head ----
    Ef = 32
    xf = jax.random.normal(keys[9], (N, 4 * Ef, H, W), dtype=jnp.float32)
    fw = jax.random.normal(keys[10], (Ef, 4 * Ef, 1, 1), dtype=jnp.float32) * 0.1
    fg = jax.random.normal(keys[11], (Ef,), dtype=jnp.float32) * 0.1 + 1.0
    fb = jax.random.normal(keys[12], (Ef,), dtype=jnp.float32) * 0.1
    fm = jax.random.normal(keys[13], (Ef,), dtype=jnp.float32) * 0.1
    fv = jax.random.uniform(keys[14], (Ef,), dtype=jnp.float32, minval=0.5, maxval=1.5)
    pw = jax.random.normal(keys[15], (1, Ef, 1, 1), dtype=jnp.float32) * 0.1
    pb = jnp.array([0.05], dtype=jnp.float32)
    ref_head = _fused_head_reference(xf, fw, fg, fb, fm, fv, pw, pb)

    out_head32 = jax.block_until_ready(fused_head_forward(
        xf, fw, fg, fb, fm, fv, pw, pb, compute_dtype=jnp.float32))
    assert out_head32.shape == (N, 1, H, W), out_head32.shape
    assert jnp.allclose(out_head32, ref_head, atol=1e-3, rtol=1e-3), \
        float(jnp.max(jnp.abs(out_head32 - ref_head)))

    out_head16 = jax.block_until_ready(fused_head_forward(
        xf, fw, fg, fb, fm, fv, pw, pb))
    assert jnp.allclose(out_head16.astype(jnp.float32), ref_head, atol=1e-1, rtol=1e-1), \
        float(jnp.max(jnp.abs(out_head16.astype(jnp.float32) - ref_head)))

    # ---- larger spatial map: exercises the multi-step lane-tiled pipeline ----
    Nl, Cl, Hl, Wl = 2, 64, 64, 64
    kl = jax.random.split(jax.random.PRNGKey(1), 6)
    xl = jax.random.normal(kl[0], (Nl, Cl, Hl, Wl), dtype=jnp.float32)
    wl = jax.random.normal(kl[1], (Cl, Cl, 1, 1), dtype=jnp.float32) * 0.1
    gl = jax.random.normal(kl[2], (Cl,), dtype=jnp.float32) * 0.1 + 1.0
    bl = jax.random.normal(kl[3], (Cl,), dtype=jnp.float32) * 0.1
    ml = jax.random.normal(kl[4], (Cl,), dtype=jnp.float32) * 0.1
    vl = jax.random.uniform(kl[5], (Cl,), dtype=jnp.float32, minval=0.5, maxval=1.5)
    ref_l = _conv_module_reference(xl, wl, gl, bl, ml, vl)
    out_l = jax.block_until_ready(conv_module_forward(xl, wl, gl, bl, ml, vl))
    assert out_l.shape == (Nl, Cl, Hl, Wl)
    assert jnp.allclose(out_l.astype(jnp.float32), ref_l, atol=6e-2, rtol=6e-2), \
        float(jnp.max(jnp.abs(out_l.astype(jnp.float32) - ref_l)))

    print("KERNEL_OK")
</pallas_src>

<mosaic_0001>
module attributes {stable_mosaic.version = 11 : i64} {
  func.func @_channel_mix_kernel(%arg0: i32, %arg1: i32, %arg2: memref<8x4xf32, #tpu.memory_space<vmem>>, %arg3: memref<8x1xf32, #tpu.memory_space<vmem>>, %arg4: memref<2x4x256xf32, #tpu.memory_space<vmem>>, %arg5: memref<2x8x256xf32, #tpu.memory_space<vmem>>) attributes {dimension_semantics = [#tpu.dimension_semantics<parallel>, #tpu.dimension_semantics<parallel>], iteration_bounds = array<i64: 1, 1>, scalar_prefetch = 0 : i64, scratch_operands = 0 : i64, tpu.core_type = #tpu.core_type<tc>, window_params = [{pipeline_mode = #tpu.pipeline_mode<synchronous>, transform_indices = @transform_0, window_bounds = array<i64: 8, 4>}, {pipeline_mode = #tpu.pipeline_mode<synchronous>, transform_indices = @transform_1, window_bounds = array<i64: 8, 1>}, {transform_indices = @transform_2, window_bounds = array<i64: 2, 4, 256>}, {transform_indices = @transform_3, window_bounds = array<i64: 2, 8, 256>}]} {
    %c0 = arith.constant 0 : index
    %c0_0 = arith.constant 0 : index
    %0 = vector.load %arg2[%c0, %c0_0] : memref<8x4xf32, #tpu.memory_space<vmem>>, vector<8x4xf32>
    %c0_1 = arith.constant 0 : index
    %c0_2 = arith.constant 0 : index
    %c0_3 = arith.constant 0 : index
    %1 = vector.load %arg4[%c0_1, %c0_2, %c0_3] : memref<2x4x256xf32, #tpu.memory_space<vmem>>, vector<1x4x256xf32>
    %2 = vector.shape_cast %1 : vector<1x4x256xf32> to vector<4x256xf32>
    %cst = arith.constant dense<0.000000e+00> : vector<8x256xf32>
    %3 = tpu.matmul %0, %2, %cst {dimension_numbers = #tpu.dot_dimension_numbers<[1], [0], [0], [1], [0, 0, 1, 1], [], []>} : vector<8x4xf32>, vector<4x256xf32>, vector<8x256xf32> -> vector<8x256xf32>
    %c0_4 = arith.constant 0 : index
    %c0_5 = arith.constant 0 : index
    %4 = vector.load %arg3[%c0_4, %c0_5] : memref<8x1xf32, #tpu.memory_space<vmem>>, vector<8x1xf32>
    %5 = vector.broadcast %4 : vector<8x1xf32> to vector<8x256xf32>
    %6 = arith.addf %3, %5 : vector<8x256xf32>
    %cst_6 = arith.constant 0.000000e+00 : f32
    %7 = vector.broadcast %cst_6 : f32 to vector<8x256xf32>
    %8 = arith.maximumf %6, %7 : vector<8x256xf32>
    %c0_7 = arith.constant 0 : index
    %c0_8 = arith.constant 0 : index
    %c0_9 = arith.constant 0 : index
    %9 = vector.load %arg5[%c0_7, %c0_8, %c0_9] : memref<2x8x256xf32, #tpu.memory_space<vmem>>, vector<1x8x256xf32>
    %10 = vector.shape_cast %9 : vector<1x8x256xf32> to vector<8x256xf32>
    %11 = vector.shape_cast %8 : vector<8x256xf32> to vector<1x8x256xf32>
    tpu.vector_store %arg5[%c0_7, %c0_8, %c0_9], %11 {strides = array<i32>} : memref<2x8x256xf32, #tpu.memory_space<vmem>>, vector<1x8x256xf32>,
    %c0_10 = arith.constant 0 : index
    %c0_11 = arith.constant 0 : index
    %12 = vector.load %arg2[%c0_10, %c0_11] : memref<8x4xf32, #tpu.memory_space<vmem>>, vector<8x4xf32>
    %c1 = arith.constant 1 : index
    %c0_12 = arith.constant 0 : index
    %c0_13 = arith.constant 0 : index
    %13 = vector.load %arg4[%c1, %c0_12, %c0_13] : memref<2x4x256xf32, #tpu.memory_space<vmem>>, vector<1x4x256xf32>
    %14 = vector.shape_cast %13 : vector<1x4x256xf32> to vector<4x256xf32>
    %cst_14 = arith.constant dense<0.000000e+00> : vector<8x256xf32>
    %15 = tpu.matmul %12, %14, %cst_14 {dimension_numbers = #tpu.dot_dimension_numbers<[1], [0], [0], [1], [0, 0, 1, 1], [], []>} : vector<8x4xf32>, vector<4x256xf32>, vector<8x256xf32> -> vector<8x256xf32>
    %c0_15 = arith.constant 0 : index
    %c0_16 = arith.constant 0 : index
    %16 = vector.load %arg3[%c0_15, %c0_16] : memref<8x1xf32, #tpu.memory_space<vmem>>, vector<8x1xf32>
    %17 = vector.broadcast %16 : vector<8x1xf32> to vector<8x256xf32>
    %18 = arith.addf %15, %17 : vector<8x256xf32>
    %cst_17 = arith.constant 0.000000e+00 : f32
    %19 = vector.broadcast %cst_17 : f32 to vector<8x256xf32>
    %20 = arith.maximumf %18, %19 : vector<8x256xf32>
    %c1_18 = arith.constant 1 : index
    %c0_19 = arith.constant 0 : index
    %c0_20 = arith.constant 0 : index
    %21 = vector.load %arg5[%c1_18, %c0_19, %c0_20] : memref<2x8x256xf32, #tpu.memory_space<vmem>>, vector<1x8x256xf32>
    %22 = vector.shape_cast %21 : vector<1x8x256xf32> to vector<8x256xf32>
    %23 = vector.shape_cast %20 : vector<8x256xf32> to vector<1x8x256xf32>
    tpu.vector_store %arg5[%c1_18, %c0_19, %c0_20], %23 {strides = array<i32>} : memref<2x8x256xf32, #tpu.memory_space<vmem>>, vector<1x8x256xf32>,
    return
  }
  func.func @transform_0(%arg0: i32, %arg1: i32) -> (i32, i32) {
    %c0_i32 = arith.constant 0 : i32
    %c0_i32_0 = arith.constant 0 : i32
    %c0_i32_1 = arith.constant 0 : i32
    return %c0_i32, %c0_i32_0 : i32, i32
  }
  func.func @transform_1(%arg0: i32, %arg1: i32) -> (i32, i32) {
    %c0_i32 = arith.constant 0 : i32
    %c0_i32_0 = arith.constant 0 : i32
    %c0_i32_1 = arith.constant 0 : i32
    return %c0_i32, %c0_i32_0 : i32, i32
  }
  func.func @transform_2(%arg0: i32, %arg1: i32) -> (i32, i32, i32) {
    %c0_i32 = arith.constant 0 : i32
    %c0_i32_0 = arith.constant 0 : i32
    return %arg0, %c0_i32, %arg1 : i32, i32, i32
  }
  func.func @transform_3(%arg0: i32, %arg1: i32) -> (i32, i32, i32) {
    %c0_i32 = arith.constant 0 : i32
    %c0_i32_0 = arith.constant 0 : i32
    return %arg0, %c0_i32, %arg1 : i32, i32, i32
  }
}

</mosaic_0001>

<bundles_post_ra>
// kernel: conv_module_forward.1
= control target key start
LH: loop header
LB: loop body
LE: loop exit
PB: predicated region body
PF: predicated region fallthrough
CT: control target
= control target key end

     0   :  { %vm28_vm0 = vcmask 1043456   ;;  %v220_v2 = vmov 0.0   ;;  %v221_v5 = vmov 0   ;;  %vm24_vm1 = vcmask 31744   ;;  %s270_s2 = inlined_call_operand.vmem [shape: f32[2,4,256], index: 2, kind: input, shape index: {}]   ;;  %s271_s0 = inlined_call_operand.vmem [shape: f32[8,4], index: 0, kind: input, shape index: {}]   ;;  %s272_s1 = inlined_call_operand.vmem [shape: f32[8,1], index: 1, kind: input, shape index: {}]   ;;  %s273_s3 = inlined_call_operand.vmem [shape: f32[2,8,256], index: 3, kind: output, shape index: {}]  }
   0x1   :  { %v15_v0 = vld [vmem:[%s270_s2] sm:$0xff]  ;;  %v209_v1 = vld [vmem:[%s270_s2 + $0x8] sm:$0xff]  ;;  %97 = vmatprep.mubr.f32.mxu0 %v220_v2  ;;  %190 = vmatprep.mubr.f32.mxu1 %v220_v2 }
   0x2   :  { %v23_v3 = vcombine.high %v15_v0, %v15_v0  ;;  %v118_v4 = vcombine.high %v209_v1, %v209_v1  ;;  %217 = vset.pattern.permute.xlu0 %v221_v5  ;;  %v16_v6 = vld [vmem:[%s272_s1] sm:$0xff] }
   0x3   :  { %v14_v7 = vld [vmem:[%s271_s0] sm:$0xff]  ;;  %19 = vperm.xlu0 %217, %v16_v6  }
   0x4   :  { %206 = vmatprep.subr.msk.mxu0 %vm28_vm0, %v23_v3  ;;  %210 = vmatprep.subr.msk.mxu1 %vm28_vm0, %v118_v4 }
   0x5   :  { %207 = vmatpush1.msk.msra.mxu0 %vm28_vm0, %v15_v0  ;;  %211 = vmatpush1.msk.msra.mxu1 %vm28_vm0, %v209_v1 }
   0x6   :  { %208 = vmatmul.mubr.msk.f32.vlgmr.msra.gmra.mxu0 %vm24_vm1, %v14_v7  ;;  %212 = vmatmul.mubr.msk.f32.vlgmr.msra.gmra.mxu1 %vm24_vm1, %v14_v7 }
   0x7   :  { %114 = vperm.xlu0 %217, %v16_v6  }
  0x7e   :  { %v20_v8 = vpop.permute.xlu0 %19 }
  0x82   :  { %v115_v9 = vpop.permute.xlu0 %114 }
  0xc6   :  { %v99_v10 = vpop.f32.mrf.mxu0  ;;  %v192_v11 = vpop.f32.mrf.mxu1 }
  0xc7   :  { %v100_v12 = vadd.f32 %v99_v10, %v20_v8  ;;  %v193_v13 = vadd.f32 %v192_v11, %v115_v9 }
  0xc8   :  { %v101_v14 = vpop.f32.mrf.mxu0  ;;  %v194_v15 = vpop.f32.mrf.mxu1 }
  0xc9   :  { %v104_v16 = vmax.f32 %v100_v12, 0.0  ;;  %v197_v17 = vmax.f32 %v193_v13, 0.0  ;;  %v102_v18 = vadd.f32 %v101_v14, %v20_v8  ;;  %v195_v19 = vadd.f32 %v194_v15, %v115_v9 }
  0xcb   :  { %106 = vst [vmem:[%s273_s3] sm:$0xff] %v104_v16  ;;  %213 = vst [vmem:[%s273_s3 + $0x10] sm:$0xff] %v197_v17  ;;  %v105_v20 = vmax.f32 %v102_v18, 0.0  ;;  %v198_v21 = vmax.f32 %v195_v19, 0.0 }
  0xcd   :  { %107 = vst [vmem:[%s273_s3 + $0x8] sm:$0xff] %v105_v20  ;;  %214 = vst [vmem:[%s273_s3 + $0x18] sm:$0xff] %v198_v21 }

</bundles_post_ra>
